<compile_context>
chip_gen: v7x
topology: tpu7x:2x2x1
jax: 0.10.0
libtpu: 0.0.40
codegen_flags: <defaults>
</compile_context>

<pallas_src>
import functools

import jax
import jax.numpy as jnp
from jax.experimental import pallas as pl
from jax.experimental.pallas import tpu as pltpu

SOBEL_X = ((1.0, 0.0, -1.0), (2.0, 0.0, -2.0), (1.0, 0.0, -1.0))
SOBEL_Y = ((1.0, 2.0, 1.0), (0.0, 0.0, 0.0), (-1.0, -2.0, -1.0))


def _pad8(v):
    return ((v + 7) // 8) * 8


def _mtl_kernel(th, width, cin, cout, write_outputs, *refs):
    """One (image n, row-tile j) grid step.

    Inputs:
      x_ref : (1, cin,  L) VMEM, native dtype, L = th * width (lane-dense)
      t_ref : (1, cout, L) VMEM, native dtype
      w_ref : (R8, cin)    VMEM f32 fused weights: rows [0:cout]  = w_out,
              rows [cout:cout+3] = w_p, row [cout+3] = column-sum(w_p)
              (the sobel-input channel sum), remaining rows zero.
    Outputs:
      outs_ref (only if write_outputs): (1, cout+3, L) merged out / out_p
      part_ref: (1, 8, 128) f32 per-image partials, revisited over j
                (row0 = sum|out - t|, row1 = sum|gx|, row2 = sum|gy|,
                 each broadcast across the 128 lanes)
    Scratch:
      ext_ref : (1, 3*width + L) f32: [2-row halo | current-tile rows | pad]
      mask_ref: (2, L) f32 hoisted validity masks (row0: j==0 tile, row1: j>0)
    """
    if write_outputs:
        x_ref, t_ref, w_ref, outs_ref, part_ref, ext_ref, mask_ref = refs
    else:
        x_ref, t_ref, w_ref, part_ref, ext_ref, mask_ref = refs
        outs_ref = None

    j = pl.program_id(1)
    L = th * width
    W2 = 2 * width

    # ---- fused 1x1-conv heads + sobel-input channel sum on the MXU ----------
    xb = x_ref[0].astype(jnp.float32)                         # (cin, L)
    dotres = jnp.dot(w_ref[...], xb,
                     preferred_element_type=jnp.float32)      # (R8, L) f32
    s_acc = dotres[cout + 3:cout + 4, :]                      # (1, L) sobel input

    if write_outputs:
        # single lane-dense store of the merged out / out_p slab
        outs_ref[0] = dotres[0:cout + 3, :].astype(outs_ref.dtype)

    # ---- once-per-image init: accumulators, halo, hoisted masks -------------
    @pl.when(j == 0)
    def _init():
        part_ref[...] = jnp.zeros_like(part_ref)
        ext_ref[...] = jnp.zeros_like(ext_ref)                # clears stale halo
        lane_w = jax.lax.broadcasted_iota(jnp.int32, (1, width), 1)
        col_ok = jnp.tile(lane_w, (1, th)) < (width - 2)      # valid conv column
        pidx = jax.lax.broadcasted_iota(jnp.int32, (1, L), 1)
        # first row tile: the two output rows that would need rows above the
        # image are invalid
        mask_ref[0:1, :] = jnp.where(jnp.logical_and(col_ok, pidx >= W2),
                                     1.0, 0.0)
        mask_ref[1:2, :] = jnp.where(col_ok, 1.0, 0.0)

    # ---- loss1 partial: sum |out - targets| over this tile -------------------
    # TODO(synk): mae_loss.compute is not defined in the source module; assumed
    # mean(|out - targets|).
    sdiff = jnp.sum(jnp.abs(dotres[0:cout, :] - t_ref[0].astype(jnp.float32)))

    # ---- loss2 partial: 3x3 valid sobel conv on the channel-summed out_p ----
    # TODO(synk): smooth_loss.compute is not defined in the source module;
    # assumed mean(|conv2d(out_p, xk)|) + mean(|conv2d(out_p, yk)|); since
    # get_sobel_kernel replicates one 3x3 kernel over the 3 channels this is
    # conv3x3 of the channel sum of out_p.
    ext_ref[:, W2:W2 + L] = s_acc     # current tile rows after the 2-row halo

    taps = {}
    for a in range(3):
        for b in range(3):
            if (a, b) == (1, 1):      # centre tap has zero weight in both
                continue
            d = a * width + b
            taps[(a, b)] = ext_ref[:, d:d + L]

    gx = (taps[(0, 0)] - taps[(0, 2)]
          + 2.0 * taps[(1, 0)] - 2.0 * taps[(1, 2)]
          + taps[(2, 0)] - taps[(2, 2)])
    gy = (taps[(0, 0)] + 2.0 * taps[(0, 1)] + taps[(0, 2)]
          - taps[(2, 0)] - 2.0 * taps[(2, 1)] - taps[(2, 2)])

    validf = jnp.where(j == 0, mask_ref[0:1, :], mask_ref[1:2, :])   # (1, L)
    sgx = jnp.sum(jnp.abs(gx) * validf)
    sgy = jnp.sum(jnp.abs(gy) * validf)

    # carry this tile's last two rows as the halo for the next row tile
    # (the j axis is "arbitrary" == sequential per image, so this is safe)
    ext_ref[:, 0:W2] = s_acc[:, L - W2:L]

    # ---- accumulate partials into the revisited per-image output block ------
    part_ref[0:1, 0:1, :] = part_ref[0:1, 0:1, :] + sdiff
    part_ref[0:1, 1:2, :] = part_ref[0:1, 1:2, :] + sgx
    part_ref[0:1, 2:3, :] = part_ref[0:1, 2:3, :] + sgy


def _vmem_limit_bytes():
    """Generation-aware VMEM limit (headroom under the physical capacity)."""
    try:
        cap = int(pltpu.get_tpu_info().vmem_capacity_bytes)
    except Exception:            # unknown / emulated target: assume v7x (64 MiB)
        cap = 64 * 1024 * 1024
    return int(min(cap - cap // 4, 100 * 1024 * 1024))


def _choose_tile_h(h, width, cin, cout, tile_h, in_itemsize, out_itemsize,
                   write_outputs, block_budget_bytes):
    """Largest row tile dividing H with tile_h*W a multiple of 128 (lane-dense
    stores) whose 8-sublane-padded, double-buffered blocks fit the budget."""
    if tile_h is not None:
        assert h % tile_h == 0, "tile_h must divide H"
        assert tile_h == h or ((tile_h * width) % 128 == 0 and tile_h >= 3), \
            "tile_h * W must be a multiple of 128 (or tile_h == H)"
        return tile_h
    # bytes per element of L: double-buffered x / t (+ merged out), plus the
    # single-copy f32 ext / mask scratch rows.
    per_lane = 2 * (_pad8(cin) + _pad8(cout)) * in_itemsize
    if write_outputs:
        per_lane += 2 * _pad8(cout + 3) * out_itemsize
    per_lane += 4 * 3
    best = None
    for cand in range(h, 0, -1):
        if h % cand:
            continue
        L = cand * width
        if L % 128 != 0 and cand != h:
            continue             # keep output stores lane-dense
        if cand >= 3 and L * per_lane <= block_budget_bytes:
            best = cand
            break
    if best is None:             # fall back to the smallest legal tile
        for cand in range(3, h + 1):
            if h % cand == 0 and ((cand * width) % 128 == 0 or cand == h):
                best = cand
                break
    return best if best is not None else h


def multitask_loss_forward(x_nchw, targets_nchw, log_vars, w_out, w_p,
                           tile_h=None, return_outputs=True):
    """task_num == 2 branch of MultiTaskLossWrapper.forward.

    x_nchw:   (N, C_in, H, W)      targets_nchw: (N, C_out, H, W)
    log_vars: (2,) f32 (nn.Parameter, init zeros)
    w_out:    (C_out, C_in), w_p: (3, C_in): synthetic 1x1-conv "model".
    return_outputs=False skips the out / out_p HBM writeback (loss-only mode).
    Returns (out, out_p, loss, loss1, loss2, log_vars); out/out_p in NCHW
    (None in loss-only mode).
    """
    n, cin, h, width = x_nchw.shape
    cout = targets_nchw.shape[1]
    assert w_out.shape == (cout, cin) and w_p.shape == (3, cin)

    out_dtype = x_nchw.dtype
    vmem_limit = _vmem_limit_bytes()
    th = _choose_tile_h(
        h, width, cin, cout, tile_h,
        in_itemsize=max(x_nchw.dtype.itemsize, targets_nchw.dtype.itemsize),
        out_itemsize=jnp.dtype(out_dtype).itemsize,
        write_outputs=return_outputs,
        block_budget_bytes=vmem_limit // 2)
    nj = h // th
    L = th * width

    # Native-dtype, lane-dense (free) reshapes — no forced f32 casts; the
    # kernel upcasts per tile, so bf16 inputs halve HBM traffic.
    xf = x_nchw.reshape(n, cin, h * width)
    tf = targets_nchw.reshape(n, cout, h * width)

    # Fused weight table: [w_out ; w_p ; column-sum(w_p)] padded to 8k rows.
    wp_sum = jnp.sum(w_p.astype(jnp.float32), axis=0, keepdims=True)
    rows = cout + 3 + 1
    r8 = _pad8(rows)
    w_all = jnp.concatenate(
        [w_out.astype(jnp.float32), w_p.astype(jnp.float32), wp_sum,
         jnp.zeros((r8 - rows, cin), jnp.float32)], axis=0)

    in_specs = [
        pl.BlockSpec((1, cin, L), lambda nb, jb: (nb, 0, jb)),
        pl.BlockSpec((1, cout, L), lambda nb, jb: (nb, 0, jb)),
        pl.BlockSpec((r8, cin), lambda nb, jb: (0, 0)),
    ]
    part_spec = pl.BlockSpec((1, 8, 128), lambda nb, jb: (nb, 0, 0))
    part_shape = jax.ShapeDtypeStruct((n, 8, 128), jnp.float32)
    if return_outputs:
        out_specs = (pl.BlockSpec((1, cout + 3, L), lambda nb, jb: (nb, 0, jb)),
                     part_spec)
        out_shape = (jax.ShapeDtypeStruct((n, cout + 3, h * width), out_dtype),
                     part_shape)
    else:
        out_specs = (part_spec,)
        out_shape = (part_shape,)

    flops = int(n * h * width * (2 * r8 * cin + 32))
    bytes_accessed = int(x_nchw.dtype.itemsize * xf.size
                         + targets_nchw.dtype.itemsize * tf.size
                         + 4 * (w_all.size + n * 8 * 128))
    if return_outputs:
        bytes_accessed += int(jnp.dtype(out_dtype).itemsize
                              * n * (cout + 3) * h * width)

    # TODO(synk): for v7x with N < 2 add a size-2 "parallel" row-half axis
    # (overlapping tiles + recomputed halo) so both TensorCores have work, and
    # consider pipeline_mode=pl.Buffered(3) on x/t if DMA becomes exposed.
    results = pl.pallas_call(
        functools.partial(_mtl_kernel, th, width, cin, cout, return_outputs),
        grid=(n, nj),
        in_specs=in_specs,
        out_specs=out_specs,
        out_shape=out_shape,
        scratch_shapes=[pltpu.VMEM((1, L + 3 * width), jnp.float32),
                        pltpu.VMEM((2, L), jnp.float32)],
        compiler_params=pltpu.CompilerParams(
            dimension_semantics=("parallel", "arbitrary"),
            vmem_limit_bytes=vmem_limit),
        cost_estimate=pl.CostEstimate(
            flops=flops, transcendentals=0, bytes_accessed=bytes_accessed),
    )(xf, tf, w_all)

    if return_outputs:
        combined, part = results
    else:
        (part,) = results

    totals = jnp.sum(part[:, 0:3, 0], axis=0)            # (3,)
    denom1 = float(n * cout * h * width)
    denom2 = float(n * (h - 2) * (width - 2))
    loss1 = totals[0] / denom1
    loss2 = (totals[1] + totals[2]) / denom2

    # scalar uncertainty weighting (torch.sum over a scalar == identity)
    precision1 = jnp.exp(-log_vars[0])
    precision2 = jnp.exp(-log_vars[1])
    loss = (precision1 * loss1 + log_vars[0]) + (precision2 * loss2 + log_vars[1])

    if return_outputs:
        out = combined[:, :cout, :].reshape(n, cout, h, width)
        out_p = combined[:, cout:cout + 3, :].reshape(n, 3, h, width)
    else:
        out, out_p = None, None
    # log_vars returned as an array (jit-safe); .tolist() belongs outside jit.
    return out, out_p, loss, loss1, loss2, log_vars


def _reference(x, targets, log_vars, w_out, w_p):
    """Pure-JAX reference with the same assumed loss semantics."""
    n, _, h, width = x.shape
    hp = jax.lax.Precision.HIGHEST
    out = jnp.einsum('oc,nchw->nohw', w_out, x, precision=hp)
    out_p = jnp.einsum('oc,nchw->nohw', w_p, x, precision=hp)
    loss1 = jnp.mean(jnp.abs(out - targets))
    s = jnp.sum(out_p, axis=1)                            # (n, h, w)

    def conv(sv, k):
        acc = jnp.zeros((n, h - 2, width - 2), jnp.float32)
        for a in range(3):
            for b in range(3):
                if k[a][b] != 0.0:
                    acc = acc + k[a][b] * sv[:, a:a + h - 2, b:b + width - 2]
        return acc

    gx, gy = conv(s, SOBEL_X), conv(s, SOBEL_Y)
    loss2 = jnp.mean(jnp.abs(gx)) + jnp.mean(jnp.abs(gy))
    loss = (jnp.exp(-log_vars[0]) * loss1 + log_vars[0]
            + jnp.exp(-log_vars[1]) * loss2 + log_vars[1])
    return out, out_p, loss, loss1, loss2


if __name__ == "__main__":
    key = jax.random.PRNGKey(0)
    k1, k2, k3, k4 = jax.random.split(key, 4)

    N, CIN, H, W, COUT = 2, 4, 16, 16, 3
    x = jax.random.normal(k1, (N, CIN, H, W), jnp.float32)          # NCHW input
    targets = jax.random.normal(k2, (N, COUT, H, W), jnp.float32)   # NCHW targets

    # TODO(synk): self.model is external to the module; a minimal pair of 1x1
    # convs is synthesized here. task_num==1/3 branches (CCLoss_new) are not
    # implemented.
    w_out = jax.random.normal(k3, (COUT, CIN), jnp.float32) * 0.1
    w_p = jax.random.normal(k4, (3, CIN), jnp.float32) * 0.1
    log_vars = jnp.zeros((2,), jnp.float32)   # nn.Parameter init, as in __init__

    # Full mode, tile_h=8 -> grid (2, 2): exercises the cross-tile sobel halo.
    out, out_p, loss, loss1, loss2, lv = multitask_loss_forward(
        x, targets, log_vars, w_out, w_p, tile_h=8)
    jax.block_until_ready((out, out_p, loss, loss1, loss2))

    # Loss-only fast path (no out/out_p writeback), auto VMEM-budgeted tile.
    _, _, lo_loss, lo_l1, lo_l2, _ = multitask_loss_forward(
        x, targets, log_vars, w_out, w_p, tile_h=None, return_outputs=False)
    jax.block_until_ready((lo_loss, lo_l1, lo_l2))

    r_out, r_out_p, r_loss, r_loss1, r_loss2 = _reference(
        x, targets, log_vars, w_out, w_p)

    tol = dict(atol=5e-3, rtol=5e-3)
    ok = (jnp.allclose(out, r_out, **tol)
          and jnp.allclose(out_p, r_out_p, **tol)
          and jnp.allclose(loss1, r_loss1, **tol)
          and jnp.allclose(loss2, r_loss2, **tol)
          and jnp.allclose(loss, r_loss, **tol)
          and jnp.allclose(lo_l1, loss1, atol=1e-4, rtol=1e-4)
          and jnp.allclose(lo_l2, loss2, atol=1e-4, rtol=1e-4)
          and jnp.allclose(lo_loss, loss, atol=1e-4, rtol=1e-4))
    if not bool(ok):
        raise SystemExit("numerical mismatch vs pure-JAX reference")
    print("KERNEL_OK")
</pallas_src>

<mosaic_0001>
module attributes {stable_mosaic.version = 11 : i64} {
  func.func @_mtl_kernel(%arg0: i32, %arg1: i32, %arg2: memref<1x4x128xf32, #tpu.memory_space<vmem>>, %arg3: memref<1x3x128xf32, #tpu.memory_space<vmem>>, %arg4: memref<8x4xf32, #tpu.memory_space<vmem>>, %arg5: memref<1x6x128xf32, #tpu.memory_space<vmem>>, %arg6: memref<1x8x128xf32, #tpu.memory_space<vmem>>, %arg7: memref<1x176xf32, #tpu.memory_space<vmem>>, %arg8: memref<2x128xf32, #tpu.memory_space<vmem>>) attributes {dimension_semantics = [#tpu.dimension_semantics<parallel>, #tpu.dimension_semantics<arbitrary>], iteration_bounds = array<i64: 2, 2>, scalar_prefetch = 0 : i64, scratch_operands = 2 : i64, tpu.core_type = #tpu.core_type<tc>, window_params = [{transform_indices = @transform_0, window_bounds = array<i64: 1, 4, 128>}, {transform_indices = @transform_1, window_bounds = array<i64: 1, 3, 128>}, {pipeline_mode = #tpu.pipeline_mode<synchronous>, transform_indices = @transform_2, window_bounds = array<i64: 8, 4>}, {transform_indices = @transform_3, window_bounds = array<i64: 1, 6, 128>}, {transform_indices = @transform_4, window_bounds = array<i64: 1, 8, 128>}]} {
    %c0 = arith.constant 0 : index
    %c0_0 = arith.constant 0 : index
    %c0_1 = arith.constant 0 : index
    %0 = vector.load %arg2[%c0, %c0_0, %c0_1] : memref<1x4x128xf32, #tpu.memory_space<vmem>>, vector<1x4x128xf32>
    %1 = vector.shape_cast %0 : vector<1x4x128xf32> to vector<4x128xf32>
    %c0_2 = arith.constant 0 : index
    %c0_3 = arith.constant 0 : index
    %2 = vector.load %arg4[%c0_2, %c0_3] : memref<8x4xf32, #tpu.memory_space<vmem>>, vector<8x4xf32>
    %cst = arith.constant dense<0.000000e+00> : vector<8x128xf32>
    %3 = tpu.matmul %2, %1, %cst {dimension_numbers = #tpu.dot_dimension_numbers<[1], [0], [0], [1], [0, 0, 1, 1], [], []>} : vector<8x4xf32>, vector<4x128xf32>, vector<8x128xf32> -> vector<8x128xf32>
    %4 = vector.extract_strided_slice %3 {offsets = [6, 0], sizes = [1, 128], strides = [1, 1]} : vector<8x128xf32> to vector<1x128xf32>
    %5 = vector.extract_strided_slice %3 {offsets = [0, 0], sizes = [6, 128], strides = [1, 1]} : vector<8x128xf32> to vector<6x128xf32>
    %c0_4 = arith.constant 0 : index
    %c0_5 = arith.constant 0 : index
    %c0_6 = arith.constant 0 : index
    %6 = vector.load %arg5[%c0_4, %c0_5, %c0_6] : memref<1x6x128xf32, #tpu.memory_space<vmem>>, vector<1x6x128xf32>
    %7 = vector.shape_cast %6 : vector<1x6x128xf32> to vector<6x128xf32>
    %8 = vector.shape_cast %5 : vector<6x128xf32> to vector<1x6x128xf32>
    tpu.vector_store %arg5[%c0_4, %c0_5, %c0_6], %8 {strides = array<i32>} : memref<1x6x128xf32, #tpu.memory_space<vmem>>, vector<1x6x128xf32>,
    %c0_i32 = arith.constant 0 : i32
    %9 = arith.cmpi eq, %arg1, %c0_i32 : i32
    %10 = arith.extui %9 : i1 to i32
    %c0_i32_7 = arith.constant 0 : i32
    %11 = arith.cmpi ne, %10, %c0_i32_7 : i32
    scf.if %11 {
      %cst_54 = arith.constant 0.000000e+00 : f32
      %78 = vector.broadcast %cst_54 : f32 to vector<1x8x128xf32>
      %c0_55 = arith.constant 0 : index
      %c0_56 = arith.constant 0 : index
      %c0_57 = arith.constant 0 : index
      %79 = vector.load %arg6[%c0_55, %c0_56, %c0_57] : memref<1x8x128xf32, #tpu.memory_space<vmem>>, vector<1x8x128xf32>
      tpu.vector_store %arg6[%c0_55, %c0_56, %c0_57], %78 {strides = array<i32>} : memref<1x8x128xf32, #tpu.memory_space<vmem>>, vector<1x8x128xf32>,
      %cst_58 = arith.constant 0.000000e+00 : f32
      %80 = vector.broadcast %cst_58 : f32 to vector<1x176xf32>
      %c0_59 = arith.constant 0 : index
      %c0_60 = arith.constant 0 : index
      %81 = vector.load %arg7[%c0_59, %c0_60] : memref<1x176xf32, #tpu.memory_space<vmem>>, vector<1x176xf32>
      tpu.vector_store %arg7[%c0_59, %c0_60], %80 {strides = array<i32>} : memref<1x176xf32, #tpu.memory_space<vmem>>, vector<1x176xf32>,
      %82 = tpu.iota {dimensions = array<i32: 1>} : vector<1x16xi32>
      %83 = tpu.concatenate %82, %82, %82, %82, %82, %82, %82, %82 in 1 : vector<1x16xi32>, vector<1x16xi32>, vector<1x16xi32>, vector<1x16xi32>, vector<1x16xi32>, vector<1x16xi32>, vector<1x16xi32>, vector<1x16xi32> -> vector<1x128xi32>
      %c14_i32 = arith.constant 14 : i32
      %84 = vector.broadcast %c14_i32 : i32 to vector<1x128xi32>
      %85 = arith.cmpi slt, %83, %84 : vector<1x128xi32>
      %86 = tpu.iota {dimensions = array<i32: 1>} : vector<1x128xi32>
      %c32_i32 = arith.constant 32 : i32
      %87 = vector.broadcast %c32_i32 : i32 to vector<1x128xi32>
      %88 = arith.cmpi sge, %86, %87 : vector<1x128xi32>
      %89 = arith.andi %85, %88 : vector<1x128xi1>
      %cst_61 = arith.constant 1.000000e+00 : f32
      %cst_62 = arith.constant 0.000000e+00 : f32
      %90 = vector.broadcast %cst_61 : f32 to vector<1x128xf32>
      %91 = vector.broadcast %cst_62 : f32 to vector<1x128xf32>
      %92 = arith.select %89, %90, %91 : vector<1x128xi1>, vector<1x128xf32>
      %c0_63 = arith.constant 0 : index
      %c0_64 = arith.constant 0 : index
      %93 = vector.load %arg8[%c0_63, %c0_64] : memref<2x128xf32, #tpu.memory_space<vmem>>, vector<1x128xf32>
      tpu.vector_store %arg8[%c0_63, %c0_64], %92 {strides = array<i32>} : memref<2x128xf32, #tpu.memory_space<vmem>>, vector<1x128xf32>,
      %cst_65 = arith.constant 1.000000e+00 : f32
      %cst_66 = arith.constant 0.000000e+00 : f32
      %94 = vector.broadcast %cst_65 : f32 to vector<1x128xf32>
      %95 = vector.broadcast %cst_66 : f32 to vector<1x128xf32>
      %96 = arith.select %85, %94, %95 : vector<1x128xi1>, vector<1x128xf32>
      %c1_67 = arith.constant 1 : index
      %c0_68 = arith.constant 0 : index
      %97 = vector.load %arg8[%c1_67, %c0_68] : memref<2x128xf32, #tpu.memory_space<vmem>>, vector<1x128xf32>
      tpu.vector_store %arg8[%c1_67, %c0_68], %96 {strides = array<i32>} : memref<2x128xf32, #tpu.memory_space<vmem>>, vector<1x128xf32>,
    } else {
    }
    %12 = vector.extract_strided_slice %3 {offsets = [0, 0], sizes = [3, 128], strides = [1, 1]} : vector<8x128xf32> to vector<3x128xf32>
    %c0_8 = arith.constant 0 : index
    %c0_9 = arith.constant 0 : index
    %c0_10 = arith.constant 0 : index
    %13 = vector.load %arg3[%c0_8, %c0_9, %c0_10] : memref<1x3x128xf32, #tpu.memory_space<vmem>>, vector<1x3x128xf32>
    %14 = vector.shape_cast %13 : vector<1x3x128xf32> to vector<3x128xf32>
    %15 = arith.subf %12, %14 : vector<3x128xf32>
    %16 = math.absf %15 : vector<3x128xf32>
    %17 = vector.shape_cast %16 : vector<3x128xf32> to vector<1x3x128xf32>
    %cst_11 = arith.constant dense<0.000000e+00> : vector<1xf32>
    %18 = vector.multi_reduction <add>, %17, %cst_11 [1, 2] : vector<1x3x128xf32> to vector<1xf32>
    %19 = vector.shape_cast %18 : vector<1xf32> to vector<1x1x1xf32>
    %20 = vector.extract %19[0, 0, 0] : f32 from vector<1x1x1xf32>
    %c0_12 = arith.constant 0 : index
    %c32 = arith.constant 32 : index
    %21 = vector.load %arg7[%c0_12, %c32] : memref<1x176xf32, #tpu.memory_space<vmem>>, vector<1x128xf32>
    tpu.vector_store %arg7[%c0_12, %c32], %4 {strides = array<i32>} : memref<1x176xf32, #tpu.memory_space<vmem>>, vector<1x128xf32>,
    %c0_13 = arith.constant 0 : index
    %c0_14 = arith.constant 0 : index
    %22 = vector.load %arg7[%c0_13, %c0_14] : memref<1x176xf32, #tpu.memory_space<vmem>>, vector<1x128xf32>
    %c0_15 = arith.constant 0 : index
    %c1 = arith.constant 1 : index
    %23 = vector.load %arg7[%c0_15, %c1] : memref<1x176xf32, #tpu.memory_space<vmem>>, vector<1x128xf32>
    %c0_16 = arith.constant 0 : index
    %c2 = arith.constant 2 : index
    %24 = vector.load %arg7[%c0_16, %c2] : memref<1x176xf32, #tpu.memory_space<vmem>>, vector<1x128xf32>
    %c0_17 = arith.constant 0 : index
    %c16 = arith.constant 16 : index
    %25 = vector.load %arg7[%c0_17, %c16] : memref<1x176xf32, #tpu.memory_space<vmem>>, vector<1x128xf32>
    %c0_18 = arith.constant 0 : index
    %c18 = arith.constant 18 : index
    %26 = vector.load %arg7[%c0_18, %c18] : memref<1x176xf32, #tpu.memory_space<vmem>>, vector<1x128xf32>
    %c0_19 = arith.constant 0 : index
    %c32_20 = arith.constant 32 : index
    %27 = vector.load %arg7[%c0_19, %c32_20] : memref<1x176xf32, #tpu.memory_space<vmem>>, vector<1x128xf32>
    %c0_21 = arith.constant 0 : index
    %c33 = arith.constant 33 : index
    %28 = vector.load %arg7[%c0_21, %c33] : memref<1x176xf32, #tpu.memory_space<vmem>>, vector<1x128xf32>
    %c0_22 = arith.constant 0 : index
    %c34 = arith.constant 34 : index
    %29 = vector.load %arg7[%c0_22, %c34] : memref<1x176xf32, #tpu.memory_space<vmem>>, vector<1x128xf32>
    %30 = arith.subf %22, %24 : vector<1x128xf32>
    %cst_23 = arith.constant 2.000000e+00 : f32
    %31 = vector.broadcast %cst_23 : f32 to vector<1x128xf32>
    %32 = arith.mulf %31, %25 : vector<1x128xf32>
    %33 = arith.addf %30, %32 : vector<1x128xf32>
    %cst_24 = arith.constant 2.000000e+00 : f32
    %34 = vector.broadcast %cst_24 : f32 to vector<1x128xf32>
    %35 = arith.mulf %34, %26 : vector<1x128xf32>
    %36 = arith.subf %33, %35 : vector<1x128xf32>
    %37 = arith.addf %36, %27 : vector<1x128xf32>
    %38 = arith.subf %37, %29 : vector<1x128xf32>
    %cst_25 = arith.constant 2.000000e+00 : f32
    %39 = vector.broadcast %cst_25 : f32 to vector<1x128xf32>
    %40 = arith.mulf %39, %23 : vector<1x128xf32>
    %41 = arith.addf %22, %40 : vector<1x128xf32>
    %42 = arith.addf %41, %24 : vector<1x128xf32>
    %43 = arith.subf %42, %27 : vector<1x128xf32>
    %cst_26 = arith.constant 2.000000e+00 : f32
    %44 = vector.broadcast %cst_26 : f32 to vector<1x128xf32>
    %45 = arith.mulf %44, %28 : vector<1x128xf32>
    %46 = arith.subf %43, %45 : vector<1x128xf32>
    %47 = arith.subf %46, %29 : vector<1x128xf32>
    %c0_i32_27 = arith.constant 0 : i32
    %48 = arith.cmpi eq, %arg1, %c0_i32_27 : i32
    %c0_28 = arith.constant 0 : index
    %c0_29 = arith.constant 0 : index
    %49 = vector.load %arg8[%c0_28, %c0_29] : memref<2x128xf32, #tpu.memory_space<vmem>>, vector<1x128xf32>
    %c1_30 = arith.constant 1 : index
    %c0_31 = arith.constant 0 : index
    %50 = vector.load %arg8[%c1_30, %c0_31] : memref<2x128xf32, #tpu.memory_space<vmem>>, vector<1x128xf32>
    %51 = arith.select %48, %49, %50 : vector<1x128xf32>
    %52 = math.absf %38 : vector<1x128xf32>
    %53 = arith.mulf %52, %51 : vector<1x128xf32>
    %54 = vector.shape_cast %53 : vector<1x128xf32> to vector<1x1x128xf32>
    %cst_32 = arith.constant dense<0.000000e+00> : vector<1xf32>
    %55 = vector.multi_reduction <add>, %54, %cst_32 [1, 2] : vector<1x1x128xf32> to vector<1xf32>
    %56 = vector.shape_cast %55 : vector<1xf32> to vector<1x1x1xf32>
    %57 = vector.extract %56[0, 0, 0] : f32 from vector<1x1x1xf32>
    %58 = math.absf %47 : vector<1x128xf32>
    %59 = arith.mulf %58, %51 : vector<1x128xf32>
    %60 = vector.shape_cast %59 : vector<1x128xf32> to vector<1x1x128xf32>
    %cst_33 = arith.constant dense<0.000000e+00> : vector<1xf32>
    %61 = vector.multi_reduction <add>, %60, %cst_33 [1, 2] : vector<1x1x128xf32> to vector<1xf32>
    %62 = vector.shape_cast %61 : vector<1xf32> to vector<1x1x1xf32>
    %63 = vector.extract %62[0, 0, 0] : f32 from vector<1x1x1xf32>
    %64 = vector.extract_strided_slice %4 {offsets = [0, 96], sizes = [1, 32], strides = [1, 1]} : vector<1x128xf32> to vector<1x32xf32>
    %c0_34 = arith.constant 0 : index
    %c0_35 = arith.constant 0 : index
    %65 = vector.load %arg7[%c0_34, %c0_35] : memref<1x176xf32, #tpu.memory_space<vmem>>, vector<1x32xf32>
    tpu.vector_store %arg7[%c0_34, %c0_35], %64 {strides = array<i32>} : memref<1x176xf32, #tpu.memory_space<vmem>>, vector<1x32xf32>,
    %c0_36 = arith.constant 0 : index
    %c0_37 = arith.constant 0 : index
    %c0_38 = arith.constant 0 : index
    %66 = vector.load %arg6[%c0_36, %c0_37, %c0_38] : memref<1x8x128xf32, #tpu.memory_space<vmem>>, vector<1x1x128xf32>
    %67 = vector.broadcast %20 : f32 to vector<1x1x128xf32>
    %68 = arith.addf %66, %67 : vector<1x1x128xf32>
    %c0_39 = arith.constant 0 : index
    %c0_40 = arith.constant 0 : index
    %c0_41 = arith.constant 0 : index
    %69 = vector.load %arg6[%c0_39, %c0_40, %c0_41] : memref<1x8x128xf32, #tpu.memory_space<vmem>>, vector<1x1x128xf32>
    tpu.vector_store %arg6[%c0_39, %c0_40, %c0_41], %68 {strides = array<i32>} : memref<1x8x128xf32, #tpu.memory_space<vmem>>, vector<1x1x128xf32>,
    %c0_42 = arith.constant 0 : index
    %c1_43 = arith.constant 1 : index
    %c0_44 = arith.constant 0 : index
    %70 = vector.load %arg6[%c0_42, %c1_43, %c0_44] : memref<1x8x128xf32, #tpu.memory_space<vmem>>, vector<1x1x128xf32>
    %71 = vector.broadcast %57 : f32 to vector<1x1x128xf32>
    %72 = arith.addf %70, %71 : vector<1x1x128xf32>
    %c0_45 = arith.constant 0 : index
    %c1_46 = arith.constant 1 : index
    %c0_47 = arith.constant 0 : index
    %73 = vector.load %arg6[%c0_45, %c1_46, %c0_47] : memref<1x8x128xf32, #tpu.memory_space<vmem>>, vector<1x1x128xf32>
    tpu.vector_store %arg6[%c0_45, %c1_46, %c0_47], %72 {strides = array<i32>} : memref<1x8x128xf32, #tpu.memory_space<vmem>>, vector<1x1x128xf32>,
    %c0_48 = arith.constant 0 : index
    %c2_49 = arith.constant 2 : index
    %c0_50 = arith.constant 0 : index
    %74 = vector.load %arg6[%c0_48, %c2_49, %c0_50] : memref<1x8x128xf32, #tpu.memory_space<vmem>>, vector<1x1x128xf32>
    %75 = vector.broadcast %63 : f32 to vector<1x1x128xf32>
    %76 = arith.addf %74, %75 : vector<1x1x128xf32>
    %c0_51 = arith.constant 0 : index
    %c2_52 = arith.constant 2 : index
    %c0_53 = arith.constant 0 : index
    %77 = vector.load %arg6[%c0_51, %c2_52, %c0_53] : memref<1x8x128xf32, #tpu.memory_space<vmem>>, vector<1x1x128xf32>
    tpu.vector_store %arg6[%c0_51, %c2_52, %c0_53], %76 {strides = array<i32>} : memref<1x8x128xf32, #tpu.memory_space<vmem>>, vector<1x1x128xf32>,
    return
  }
  func.func @transform_0(%arg0: i32, %arg1: i32) -> (i32, i32, i32) {
    %c0_i32 = arith.constant 0 : i32
    %c0_i32_0 = arith.constant 0 : i32
    return %arg0, %c0_i32, %arg1 : i32, i32, i32
  }
  func.func @transform_1(%arg0: i32, %arg1: i32) -> (i32, i32, i32) {
    %c0_i32 = arith.constant 0 : i32
    %c0_i32_0 = arith.constant 0 : i32
    return %arg0, %c0_i32, %arg1 : i32, i32, i32
  }
  func.func @transform_2(%arg0: i32, %arg1: i32) -> (i32, i32) {
    %c0_i32 = arith.constant 0 : i32
    %c0_i32_0 = arith.constant 0 : i32
    %c0_i32_1 = arith.constant 0 : i32
    return %c0_i32, %c0_i32_0 : i32, i32
  }
  func.func @transform_3(%arg0: i32, %arg1: i32) -> (i32, i32, i32) {
    %c0_i32 = arith.constant 0 : i32
    %c0_i32_0 = arith.constant 0 : i32
    return %arg0, %c0_i32, %arg1 : i32, i32, i32
  }
  func.func @transform_4(%arg0: i32, %arg1: i32) -> (i32, i32, i32) {
    %c0_i32 = arith.constant 0 : i32
    %c0_i32_0 = arith.constant 0 : i32
    %c0_i32_1 = arith.constant 0 : i32
    return %arg0, %c0_i32, %c0_i32_0 : i32, i32, i32
  }
}

</mosaic_0001>

<bundles_post_ra>
// kernel: tpu_custom_call.1
= control target key start
LH: loop header
LB: loop body
LE: loop exit
PB: predicated region body
PF: predicated region fallthrough
CT: control target
= control target key end

     0   :  { %10 = vsyncpa [#allocation5], 0  ;;  %s1134_s0 = inlined_call_operand.vmem [shape: f32[2,4,256], index: 0, kind: input, shape index: {}]   ;;  %s1135_s1 = inlined_call_operand.vmem [shape: f32[2,3,256], index: 1, kind: input, shape index: {}]   ;;  %s1136_s2 = inlined_call_operand.vmem [shape: f32[8,4], index: 2, kind: input, shape index: {}]   ;;  %s1137_s3 = inlined_call_operand.vmem [shape: f32[2,6,256], index: 3, kind: output, shape index: {0}]   ;;  %s1138_s4 = inlined_call_operand.hbm [shape: f32[2,8,128], index: 4, kind: output, shape index: {1}]  }
   0x1   :  { %12 = vsyncpa [#allocation5 + $0x1], 0  ;;  %s964_s15 = smov 0   ;;  %s966_s16 = smov 0  }
   0x2   :  { %s968_s17 = smov 0   ;;  %s970_s18 = smov 0  }
   0x3   :  { %s972_s19 = smov 0   ;;  %s974_s20 = smov 0  }
   0x4   :  { %s976_s21 = smov 0   ;;  %s978_s22 = smov 0  }
   0x5 LB: > { %s701_s23 = sadd.s32 4294967295, %s917_s22   ;;  %s702_s24 = sadd.s32 4294967294, %s917_s22   ;;  %s917_s22 = sphi %s978_s22, %s18_s22   ;;  %s913_s21 = sphi %s976_s21, %s1152_s21   ;;  %s909_s20 = sphi %s974_s20, %s1151_s20   ;;  %s905_s19 = sphi %s972_s19, %s1150_s19   ;;  %s901_s18 = sphi %s970_s18, %s1149_s18   ;;  %s897_s17 = sphi %s968_s17, %s1148_s17   ;;  %s893_s16 = sphi %s966_s16, %s1147_s16   ;;  %s889_s15 = sphi %s964_s15, %s1146_s15  }
   0x6   : > { %s27_s25 = sadd.s32 1, %s909_s20  ;;  %s30_s26 = sadd.s32 1, %s913_s21 }
   0x7   : > { %p28_p0 = scmp.ge.s32.totalorder %s27_s25, 2  ;;  %p152_p1 = scmp.ne.s32.totalorder %s897_s17, %s893_s16 }
   0x8   : > { %p153_p2 = scmp.eq.s32.totalorder %s701_s23, 3  ;;  %p158_p4 = scmp.ne.s32.totalorder %s893_s16, %s889_s15 }
   0x9   : > { %s1154_s25 = smov (%p28_p0, %s27_s25), 0  ;;  %s1156_s26 = smov (!%p28_p0, %s30_s26), %s913_s21 }
   0xa   : > { %p1013_p3 = por %p153_p2, %p152_p1  ;;  %p32_p5 = scmp.ge.s32.totalorder %s1156_s26, 2 }
   0xb   : > { %p159_p6 = scmp.eq.s32.totalorder %s702_s24, 3  ;;  %p705_p7 = scmp.ge.s32.totalorder %s917_s22, 1 }
   0xc   : > { %p202_p8 = scmp.lt.s32.totalorder %s917_s22, 5  ;;  %s1158_s26 = smov (%p32_p5, %s1156_s26), 0 }
   0xd   : > { %1142 = sst [smem:[#allocation7_spill]] %s1158_s26  ;;  %p1023_p9 = por %p159_p6, %p158_p4 }
   0xe   : > { %p203_p10 = pnand %p705_p7, %p202_p8  ;;  %s139_s29 = ssub.s32 %s913_s21, %s1158_s26 }
   0xf   : > { %s142_s30 = sadd.s32 1, %s897_s17  ;;  %p140_p11 = scmp.eq.s32.totalorder %s139_s29, 0  ;;  %v919_v0 = vmov (!%p203_p10), 0.0   ;;  %vm920_vm0 = vmmov (!%p203_p10), 0   ;;  %vm277_vm1 = vcmask (!%p203_p10), 1043456   ;;  %v272_v1 = vld [vmem:[%s1136_s2] sm:$0xff] (!%p203_p10) }
  0x10   : > { %206 = sbr.rel (%p203_p10) target bundleno = 744 (0x2e8), region = 32  ;;  %s1139_s6 = sand.u32 (!%p203_p10), 1, %s893_s16   ;;  %722 = vmatprep.subr.mxu0 (!%p203_p10), %v919_v0  ;;  %724 = vmatprep.mubr.msk.f32.mxu0 (!%p203_p10), %vm920_vm0, %v919_v0  ;;  %vm273_vm2 = vcmask (!%p203_p10), 31744  }
  0x11   : > { %s1031_s5 = scalar_select %p140_p11, %s897_s17, %s142_s30  }
  0x12   : > { %p247_p12 = scmp.lt.s32.totalorder (!%p203_p10), %s905_s19, 1  ;;  %s706_s7 = sshll.u32 (!%p203_p10), %s1139_s6, 3 }
  0x13   : > { %p249_p13 = scmp.lt.s32.totalorder (!%p203_p10), %s901_s18, 1  ;;  %p352_p0 = scmp.eq.s32.totalorder (!%p203_p10), %s901_s18, 0 }
  0x14   : > { %p715_p1 = scmp.ne.s32.totalorder (!%p203_p10), %s901_s18, 0 }
  0x17   : > { %s248_s8 = scalar_select %p247_p12, %s905_s19, 1 }
  0x18   : > { %s250_s9 = scalar_select %p249_p13, %s901_s18, 1 }
  0x19   : > { %s707_s10 = sshll.u32 %s248_s8, 1  ;;  %v357_v5 = vlaneseq (!%p715_p1)  ;;  %v921_v7 = vmov (!%p715_p1), 0.0   ;;  %s922_s26 = smov (!%p715_p1), 16   ;;  %vm378_vm4 = vcmask (!%p715_p1), 130048   ;;  %vm380_vm5 = vcmask (!%p715_p1), 261120  }
  0x1a   : > { %s252_s11 = sadd.s32 %s707_s10, %s250_s9  ;;  %s923_s6 = smov (!%p715_p1), 48   ;;  %vm382_vm6 = vcmask (!%p715_p1), 392192   ;;  %vm384_vm7 = vcmask (!%p715_p1), 523264   ;;  %vm386_vm8 = vcmask (!%p715_p1), 654336   ;;  %vm388_vm9 = vcmask (!%p715_p1), 785408  }
  0x1b   : > { %s708_s12 = sshll.u32 %s252_s11, 2  ;;  %s712_s8 = sshll.u32 %s252_s11, 3  ;;  %v363_v6 = vand.u32 (!%p715_p1), 127, %v357_v5  ;;  %vm359_vm3 = vcmp.lt.s32.totalorder (!%p715_p1), %v357_v5, 176  ;;  %vm390_vm10 = vcmask (!%p715_p1), 916480  }
  0x1c   : > { %s254_s23 = scalar_lea.vmem %s1134_s0, %s708_s12  ;;  %s1046_s30 = scalar_lea.vmem %s1135_s1, %s708_s12  ;;  %361 = vst.msk [vmem:[#allocation2] sm:$0x3] (!%p715_p1), %vm359_vm3, %v921_v7 }
  0x1d   : > { %v271_v2 = vld [vmem:[%s254_s23] sm:$0xf]  ;;  %s270_s13 = scalar_lea.vmem %s1137_s3, %s712_s8  ;;  %s1058_s12 = scalar_lea.vmem [#allocation4], %s706_s7  ;;  %364 = vrot.lane.b32.xlu0 (!%p715_p1), %v363_v6, %s922_s26  ;;  %368 = vrot.lane.b32.xlu1 (!%p715_p1), %v363_v6, %s923_s6  ;;  %vm393_vm11 = vcmp.ge.s32.totalorder (!%p715_p1), %v363_v6, 32 }
  0x1e   : > { %723 = vmatpush3.msk.msra.mxu0 %vm277_vm1, %v271_v2  ;;  %356 = vst [vmem:[%s1058_s12] sm:$0xff] (!%p715_p1), %v921_v7  ;;  %s924_s11 = smov (!%p715_p1), 32   ;;  %s925_s14 = smov (!%p715_p1), 64  }
  0x1f   : > { %725 = vmatmul.mubr.msk.f32.vlgmr.msra.gmra.mrb[0].mxu0 %vm273_vm2, %v272_v1  ;;  %s926_s7 = smov (!%p715_p1), 80   ;;  %s927_s23 = smov (!%p715_p1), 96  }
  0x20   : > { %s928_s24 = smov (!%p715_p1), 112  }
  0x21   : > { %366 = vrot.lane.b32.xlu0 (!%p715_p1), %v363_v6, %s924_s11  ;;  %370 = vrot.lane.b32.xlu1 (!%p715_p1), %v363_v6, %s925_s14 }
  0x25   : > { %372 = vrot.lane.b32.xlu0 (!%p715_p1), %v363_v6, %s926_s7  ;;  %374 = vrot.lane.b32.xlu1 (!%p715_p1), %v363_v6, %s927_s23 }
  0x29   : > { %376 = vrot.lane.b32.xlu0 (!%p715_p1), %v363_v6, %s928_s24 }
  0x8f   : > { %v365_v8 = vpop.permute.xlu0 (!%p715_p1), %364  ;;  %v369_v9 = vpop.permute.xlu1 (!%p715_p1), %368 }
  0x90   : > { %v379_v10 = vsel (!%p715_p1), %vm378_vm4, %v363_v6, %v365_v8 }
  0x93   : > { %v367_v11 = vpop.permute.xlu0 (!%p715_p1), %366  ;;  %v371_v12 = vpop.permute.xlu1 (!%p715_p1), %370 }
  0x94   : > { %v381_v13 = vsel (!%p715_p1), %vm380_vm5, %v379_v10, %v367_v11 }
  0x95   : > { %v383_v14 = vsel (!%p715_p1), %vm382_vm6, %v381_v13, %v369_v9 }
  0x96   : > { %v385_v15 = vsel (!%p715_p1), %vm384_vm7, %v383_v14, %v371_v12 }
  0x97   : > { %v373_v16 = vpop.permute.xlu0 (!%p715_p1), %372  ;;  %v375_v18 = vpop.permute.xlu1 (!%p715_p1), %374 }
  0x98   : > { %v387_v17 = vsel (!%p715_p1), %vm386_vm8, %v385_v15, %v373_v16 }
  0x99   : > { %v389_v19 = vsel (!%p715_p1), %vm388_vm9, %v387_v17, %v375_v18 }
  0x9b   : > { %v377_v20 = vpop.permute.xlu0 (!%p715_p1), %376 }
  0x9c   : > { %v391_v21 = vsel (!%p715_p1), %vm390_vm10, %v389_v19, %v377_v20 }
  0x9d   : > { %vm392_vm12 = vcmp.lt.s32.totalorder (!%p715_p1), %v391_v21, 14 }
  0x9e   : > { %vm394_vm13 = vmand (!%p715_p1), %vm392_vm12, %vm393_vm11  ;;  %v397_v22 = vsel (!%p715_p1), %vm392_vm12, 1.0, %v921_v7 }
  0x9f   : > { %v395_v23 = vsel (!%p715_p1), %vm394_vm13, 1.0, %v921_v7  ;;  %398 = vst [vmem:[#allocation3 + $0x1] sm:$0x1] (!%p715_p1), %v397_v22 }
  0xa0   : > { %396 = vst [vmem:[#allocation3] sm:$0x1] (!%p715_p1), %v395_v23 }
  0xed   : > { %355 = sbr.rel (%p715_p1) target bundleno = 244 (0xf4), region = 36 }
  0xf2   : > { %v1055_v3 = vpop.f32.mrb[0].mxu0 }
  0xf3   : > { %351 = vst [vmem:[%s270_s13] sm:$0x3f] %v1055_v3  ;;  %v726_v4 = vpop.f32.mrb[1].mxu0 }
  0xf4 PF: > { %v418_v24 = vlaneseq  ;;  %v929_v25 = vmov 1966171168   ;;  %v414_v28 = vcombine.high %v1055_v3, %v1055_v3  ;;  %s930_s29 = smov 32   ;;  %vm433_vm0 = vcmask 261120   ;;  %s931_s8 = smov 126  }
  0xf5   : > { %v416_v26 = vunpack.c.l.s4 %v929_v25  ;;  %s932_s9 = smov 127   ;;  %s933_s10 = smov 110   ;;  %v399_v40 = vld [vmem:[%s1046_s30] sm:$0x7]  ;;  %vm402_vm3 = vcmask 1042432   ;;  %vm447_vm4 = vcmask 1031168  }
  0xf6   : > { %v419_v27 = vshrl.u32 %v418_v24, 7  ;;  %vm437_vm14 = vcmp.ge.s32.totalorder %v418_v24, 32  ;;  %vm438_vm15 = vcmp.lt.s32.totalorder %v418_v24, 160  ;;  %vm531_vm2 = vcmp.lt.s32.totalorder %v418_v24, 32  ;;  %s934_s13 = smov 112   ;;  %s935_s26 = smov 95  }
  0xf7   : > { %v417_v29 = vunpack.c.0.s8 %v416_v26  ;;  %vm439_vm1 = vmand %vm437_vm14, %vm438_vm15  ;;  %s936_s6 = smov 96   ;;  %s937_s11 = smov 94   ;;  %v400_v41 = vsub.f32 %v1055_v3, %v399_v40  ;;  %vm484_vm5 = vcmask 1039360   ;;  %vm456_vm6 = vcmask 916480   ;;  %v498_v9 = vld [vmem:[#allocation3] sm:$0x1] }
  0xf8   : > { %vm463_vm7 = vcmask 900096   ;;  %s500_s30 = scalar_select %p352_p0, 1, 0  ;;  %vm470_vm8 = vcmask 785408   ;;  %vm493_vm9 = vcmask 777216   ;;  %vm477_vm10 = vcmask 769024  }
  0xf9   : > { %v420_v30 = vsub.s32 %v417_v29, %v419_v27  ;;  %v401_v42 = vand.u32 2147483647, %v400_v41  ;;  %v499_v10 = vld [vmem:[#allocation3 + $0x1] sm:$0x1]  ;;  %vm506_vm12 = vcmask 1040384   ;;  %s717_s14 = sshll.u32 %s905_s19, 7 }
  0xfa   : > { %v501_v2 = vstv %s500_s30  ;;  %s571_s23 = sshll.u32 %s1058_s12, 4  ;;  %s1144_s19 = sand.u32 1, %s893_s16   ;;  %s1079_s23 = int_to_ptr.vmem [resolvable:$true] %s571_s23 }
  0xfb   : > { %v421_v31 = vrot.slane %v414_v28, %v420_v30  ;;  %v403_v43 = vsel %vm402_vm3, %v401_v42, 0.0  ;;  %vm502_vm11 = vcmp.eq.s32.totalorder %v501_v2, 1  ;;  %v534_v28 = vld [vmem:[%s1058_s12] sm:$0x1] }
  0xfc   : > { %v503_v14 = vsel %vm502_vm11, %v498_v9, %v499_v10 }
  0xfd   : > { %v428_v32 = vrot.slane %v421_v31, %v420_v30 }
  0xff   : > { %v429_v33 = vcombine.high %v428_v32, %v428_v32 }
 0x101   : > { %430 = vrot.lane.b32.xlu0 %v429_v33, %s930_s29 }
 0x173   : > { %v431_v34 = vpop.permute.xlu0 %430 }
 0x174   : > { %v432_v35 = vrot.slane %v431_v34, 7 }
 0x176   : > { %v434_v36 = vsel %vm433_vm0, %v432_v35, %v431_v34 }
 0x177   : > { %440 = vst.msk [vmem:[#allocation2] sm:$0x3] %vm439_vm1, %v434_v36 }
 0x17e   : > { %v442_v37 = vld [vmem:[#allocation2] sm:$0x3] }
 0x17f   : > { %v441_v38 = vld [vmem:[#allocation2] sm:$0x1]  ;;  %444 = vrot.lane.b32.xlu0 %v442_v37, %s931_s8  ;;  %v451_v39 = vmul.f32 2.0, %v442_v37 }
 0x180   : > { %533 = vst.msk [vmem:[#allocation2] sm:$0x1] %vm531_vm2, %v431_v34 }
 0x181   : > { %481 = vrot.lane.b32.xlu1 %v451_v39, %s932_s9  ;;  %s1077_s9 = scalar_lea.hbm %s1138_s4, %s717_s14 }
 0x183   : > { %460 = vrot.lane.b32.xlu0 %v451_v39, %s933_s10  ;;  %s555_s10 = scalar_lea.sflag [#allocation5], %s1144_s19 }
 0x185   : > { %453 = vrot.lane.b32.xlu1 %v451_v39, %s934_s13  ;;  %s823_s13 = scalar_lea.vmem %s1079_s23, 128 }
 0x186   : > { %p824_p2 = scmp.ne.s32.totalorder %s1079_s23, %s823_s13 }
 0x187   : > { %490 = vrot.lane.b32.xlu0 %v451_v39, %s935_s26  ;;  %s938_s26 = smov [#allocation4]  }
 0x188   : > { %p825_p4 = pnand %p824_p2, %p1013_p3 }
 0x189   : > { %467 = vrot.lane.b32.xlu1 %v442_v37, %s936_s6  ;;  %s827_s6 = sshll.u32 %s938_s26, 4  ;;  %s828_s6 = int_to_ptr.vmem [resolvable:$false] %s827_s6 }
 0x18a   : > { %p826_p5 = pneg %p825_p4  ;;  %p830_p6 = scmp.lt.s32.totalorder %s1079_s23, %s828_s6 }
 0x18d   : > { %474 = vrot.lane.b32.xlu1 %v442_v37, %s937_s11  ;;  %s829_s11 = scalar_lea.vmem %s828_s6, 256 }
 0x18e   : > { %p831_p7 = scmp.lt.s32.totalorder %s829_s11, %s823_s13 }
 0x190   : > { %p832_p8 = por %p831_p7, %p830_p6 }
 0x192   : > { %p833_p10 = pnand %p832_p8, %p826_p5 }
 0x1a6   : > { %404 = vadd.xlane.f32.xlu0 %v403_v43 }
 0x1f1   : > { %v445_v44 = vpop.permute.xlu0 %444 }
 0x1f2   : > { %v446_v45 = vrot.slane %v445_v44, 1 }
 0x1f3   : > { %v482_v46 = vpop.permute.xlu1 %481 }
 0x1f4   : > { %v483_v47 = vrot.slane %v482_v46, 1  ;;  %v448_v49 = vsel %vm447_vm4, %v445_v44, %v446_v45  ;;  %v538_v45 = vld [vmem:[%s1058_s12 + $0x1] sm:$0x1] }
 0x1f5   : > { %v461_v48 = vpop.permute.xlu0 %460  ;;  %v450_v54 = vsub.f32 %v441_v38, %v448_v49 }
 0x1f6   : > { %v485_v50 = vsel %vm484_vm5, %v482_v46, %v483_v47  ;;  %v462_v52 = vrot.slane %v461_v48, 1  ;;  %v542_v46 = vld [vmem:[%s1058_s12 + $0x2] sm:$0x1] }
 0x1f7   : > { %v454_v51 = vpop.permute.xlu1 %453  ;;  %v487_v55 = vadd.f32 %v485_v50, %v441_v38 }
 0x1f8   : > { %v455_v53 = vrot.slane %v454_v51, 1  ;;  %v464_v60 = vsel %vm463_vm7, %v461_v48, %v462_v52 }
 0x1f9   : > { %v491_v56 = vpop.permute.xlu0 %490  ;;  %v488_v0 = vadd.f32 %v487_v55, %v448_v49 }
 0x1fa   : > { %v457_v57 = vsel %vm456_vm6, %v454_v51, %v455_v53  ;;  %v492_v61 = vrot.slane %v491_v56, 1 }
 0x1fb   : > { %v459_v58 = vadd.f32 %v457_v57, %v450_v54  ;;  %v468_v59 = vpop.permute.xlu1 %467 }
 0x1fc   : > { %v469_v62 = vrot.slane %v468_v59, 1  ;;  %v494_v5 = vsel %vm493_vm9, %v491_v56, %v492_v61 }
 0x1fd   : > { %v466_v63 = vsub.f32 %v459_v58, %v464_v60 }
 0x1fe   : > { %v471_v1 = vsel %vm470_vm8, %v468_v59, %v469_v62 }
 0x1ff   : > { %v489_v3 = vsub.f32 %v488_v0, %v471_v1  ;;  %v475_v4 = vpop.permute.xlu1 %474  ;;  %v473_v7 = vadd.f32 %v471_v1, %v466_v63 }
 0x200   : > { %v476_v6 = vrot.slane %v475_v4, 1 }
 0x201   : > { %v496_v8 = vsub.f32 %v489_v3, %v494_v5 }
 0x202   : > { %v478_v11 = vsel %vm477_vm10, %v475_v4, %v476_v6 }
 0x203   : > { %v480_v12 = vsub.f32 %v473_v7, %v478_v11  ;;  %v497_v13 = vsub.f32 %v496_v8, %v478_v11 }
 0x205   : > { %v504_v15 = vand.u32 2147483647, %v480_v12  ;;  %v517_v16 = vand.u32 2147483647, %v497_v13 }
 0x207   : > { %v505_v17 = vmul.f32 %v504_v15, %v503_v14  ;;  %v518_v18 = vmul.f32 %v517_v16, %v503_v14 }
 0x209   : > { %v507_v19 = vsel %vm506_vm12, %v505_v17, 0.0  ;;  %v519_v20 = vsel %vm506_vm12, %v518_v18, 0.0 }
 0x20a   : > { %508 = vadd.xlane.f32.xlu1 %v507_v19  ;;  %520 = vadd.xlane.f32.xlu0 %v519_v20 }
 0x233   : > { %v405_v21 = vpop.xlane.xlu0 %404 }
 0x234   : > { %v406_v22 = vrot.slane %v405_v21, 4 }
 0x236   : > { %v407_v23 = vadd.f32 %v406_v22, %v405_v21 }
 0x238   : > { %v408_v24 = vrot.slane %v407_v23, 2 }
 0x23a   : > { %v409_v25 = vadd.f32 %v408_v24, %v407_v23 }
 0x23c   : > { %v410_v26 = vrot.slane %v409_v25, 1 }
 0x23e   : > { %v411_v27 = vadd.f32 %v410_v26, %v409_v25 }
 0x240   : > { %727 = vpush %v411_v27 }
 0x271   : > { %s728_s18 = spop %727 }
 0x272   : > { %v535_v29 = vstv %s728_s18 }
 0x273   : > { %v536_v30 = vadd.f32 %v535_v29, %v534_v28 }
 0x275   : > { %537 = vst [vmem:[%s1058_s12] sm:$0x1] %v536_v30 }
 0x297   : > { %v509_v31 = vpop.xlane.xlu1 %508  ;;  %v521_v32 = vpop.xlane.xlu0 %520 }
 0x298   : > { %v510_v33 = vrot.slane %v509_v31, 4  ;;  %v522_v34 = vrot.slane %v521_v32, 4 }
 0x29a   : > { %v511_v35 = vadd.f32 %v510_v33, %v509_v31  ;;  %v523_v36 = vadd.f32 %v522_v34, %v521_v32 }
 0x29c   : > { %v512_v37 = vrot.slane %v511_v35, 2  ;;  %v524_v38 = vrot.slane %v523_v36, 2 }
 0x29e   : > { %v513_v39 = vadd.f32 %v512_v37, %v511_v35  ;;  %v525_v40 = vadd.f32 %v524_v38, %v523_v36 }
 0x2a0   : > { %v514_v41 = vrot.slane %v513_v39, 1  ;;  %v526_v42 = vrot.slane %v525_v40, 1 }
 0x2a2   : > { %v515_v43 = vadd.f32 %v514_v41, %v513_v39  ;;  %v527_v44 = vadd.f32 %v526_v42, %v525_v40 }
 0x2a4   : > { %729 = vpush %v515_v43 }
 0x2a5   : > { %731 = vpush %v527_v44 }
 0x2d5   : > { %s730_s7 = spop %729 }
 0x2d6   : > { %v539_v47 = vstv %s730_s7  ;;  %s732_s24 = spop %731 }
 0x2d7   : > { %v540_v48 = vadd.f32 %v539_v47, %v538_v45  ;;  %v543_v49 = vstv %s732_s24 }
 0x2d8   : > { %v544_v50 = vadd.f32 %v543_v49, %v542_v46 }
 0x2d9   : > { %541 = vst [vmem:[%s1058_s12 + $0x1] sm:$0x1] %v540_v48 }
 0x2da   : > { %545 = vst [vmem:[%s1058_s12 + $0x2] sm:$0x1] %v544_v50 }
 0x2db   : > { %836 = shalt.err (!%p833_p10)
}
 0x2dc   : > { %s837_s12 = scalar_lea.hbm %s1077_s9, 128  ;;  %s841_s14 = scalar_lea.hbm %s1138_s4, 256 }
 0x2dd   : > { %p838_p11 = scmp.ne.s32.totalorder %s1077_s9, %s837_s12  ;;  %p842_p0 = scmp.lt.u32.totalorder %s1077_s9, %s1138_s4 }
 0x2de   : > { %p843_p1 = scmp.lt.u32.totalorder %s841_s14, %s837_s12  ;;  %p845_p4 = scmp.lt.u32.totalorder %s837_s12, %s1077_s9 }
 0x2df   : > { %p839_p12 = pnand %p838_p11, %p1013_p3 }
 0x2e0   : > { %p844_p2 = por %p843_p1, %p842_p0 }
 0x2e1   : > { %p840_p13 = pneg %p839_p12 }
 0x2e2   : > { %p846_p5 = por %p845_p4, %p844_p2 }
 0x2e4   : > { %p847_p6 = pnand %p846_p5, %p840_p13 }
 0x2e6   : > { %850 = shalt.err (!%p847_p6)
}
 0x2e7   : > { %733 = dma.vmem_to_hbm [thread:$0]  (%p1013_p3), %s1079_s23, 128, %s1077_s9, %s555_s10  }
 0x2e8 PF: > { %p739_p7 = scmp.ge.s32.totalorder %s917_s22, 2  ;;  %s594_s29 = sand.u32 1, %s889_s15  }
 0x2e9   : > { %s595_s8 = scalar_lea.sflag [#allocation5], %s594_s29 }
 0x2ea   : > { %p736_p8 = pnand %p739_p7, %p1023_p9 }
 0x2ec   : > { %884 = dma.done.wait (!%p736_p8), %s595_s8, 128  }
 0x2ed   : > { %886 = vsyncadd (!%p736_p8), %s595_s8, 4294967168  ;;  %s18_s22 = sadd.s32 1, %s917_s22   ;;  %s1145_s27 = sld [smem:[#allocation7_spill]] }
 0x2ee   : > { %p15_p10 = scmp.ge.s32.totalorder %s18_s22, 6   ;;  %s1146_s15 = smov %s893_s16 }
 0x2ef   : > { %s1147_s16 = smov %s897_s17  ;;  %s1148_s17 = smov %s1031_s5 }
 0x2f0   : > { %s1149_s18 = smov %s909_s20  ;;  %s1150_s19 = smov %s913_s21 }
 0x2f1   : > { %s1151_s20 = smov %s1154_s25  ;;  %17 = sbr.rel (!%p15_p10) target bundleno = 5 (0x5), region = 86 }
 0x2f3   : > { %s1152_s21 = smov %s1145_s27 }
 0x2f8   :  { %600 = vsyncpa [#allocation5], 1 }
 0x2f9   :  { %602 = vsyncpa [#allocation5 + $0x1], 1 }

</bundles_post_ra>
